<compile_context>
chip_gen: v6e
topology: v6e:2x2x1
jax: 0.10.0
libtpu: 0.0.40
codegen_flags: <defaults>
</compile_context>

<pallas_src>
import jax
import jax.numpy as jnp
from jax.experimental import pallas as pl
from jax.experimental.pallas import tpu as pltpu

LANES = 128


def _num_tensorcores() -> int:
    """Best-effort TensorCore count per chip (2 on v7x megacore, else 1).

    Only influences the parallel-chunk split (performance); the kernel is
    correct for any value, so every failure path falls back to 1.
    """
    try:
        info = pltpu.get_tpu_info()
        for attr in ("num_tensorcores", "tensorcores_per_chip", "num_cores",
                     "cores_per_chip", "core_count"):
            v = getattr(info, attr, None)
            if isinstance(v, int) and 1 <= v <= 8:
                return v
    except Exception:
        pass
    try:
        kind = jax.devices()[0].device_kind.lower()
        if "v7" in kind or "7x" in kind:
            return 2
    except Exception:
        pass
    return 1


def _make_kl_kernel(m_rows, tile_rows, steps_per_chunk, need_mask):
    """Build the per-tile kernel; all shape constants are baked in at trace time."""

    def kernel(mu0_ref, mu1_ref, acc_ref):
        # acc_ref: (1, 1, LANES) f32 per-chunk lane accumulator (output block,
        # resident across the "arbitrary" reduction axis).
        p = pl.program_id(0)
        k = pl.program_id(1)

        @pl.when(k == 0)
        def _():
            acc_ref[...] = jnp.zeros_like(acc_ref)

        # Cast to f32 inside the kernel; inputs were DMA'd in their native
        # dtype (halves HBM read traffic for bf16/f16 inputs).
        d = mu0_ref[...].astype(jnp.float32) - mu1_ref[...].astype(jnp.float32)

        if not need_mask:
            # Everything divides evenly: single unmasked path.
            acc_ref[...] += jnp.sum(d * d, axis=0).reshape(1, 1, LANES)
        else:
            # Global (unclamped) tile index: clamped duplicate tiles get an
            # index >= num_tiles and are therefore fully masked to zero.
            tile_idx = p * steps_per_chunk + k
            is_full = (tile_idx + 1) * tile_rows <= m_rows

            @pl.when(is_full)
            def _():
                # Hot path: full tiles, no iota/cmp/select on the VALU slots.
                acc_ref[...] += jnp.sum(d * d, axis=0).reshape(1, 1, LANES)

            @pl.when(jnp.logical_not(is_full))
            def _():
                # Cold path: partial last tile / clamped duplicates. Mask rows
                # past the end of the real data BEFORE squaring (partial last
                # blocks have undefined VMEM contents). Sublane iota
                # (tile_rows, 1) broadcast across lanes keeps it cheap.
                row = (jax.lax.broadcasted_iota(jnp.int32, (tile_rows, 1), 0)
                       + tile_idx * tile_rows)
                dm = jnp.where(row < m_rows, d, 0.0)
                acc_ref[...] += jnp.sum(dm * dm, axis=0).reshape(1, 1, LANES)

    return kernel


def kl_divergence_loss(output, target):
    """Mean KL divergence between Normal(output, 1) and Normal(target, 1)."""
    assert output.shape == target.shape, (output.shape, target.shape)
    n_elems = output.size

    o = output.reshape(-1)
    t = target.reshape(-1)

    m_rows = n_elems // LANES
    body = m_rows * LANES

    # <128-element tail handled in plain JAX (tiny), so the big body needs no
    # jnp.pad copy (padding would re-materialize BOTH inputs: ~3x HBM traffic).
    if body < n_elems:
        d_tail = o[body:].astype(jnp.float32) - t[body:].astype(jnp.float32)
        tail = jnp.sum(d_tail * d_tail)
    else:
        tail = jnp.float32(0.0)

    if m_rows == 0:
        total = tail
    else:
        o_body = o if body == n_elems else o[:body]
        t_body = t if body == n_elems else t[:body]
        o2 = o_body.reshape(m_rows, LANES)
        t2 = t_body.reshape(m_rows, LANES)

        # Tile sizing: ~2 MiB / input / buffer -> 2 inputs x 2 buffers x 2 MiB
        # = 8 MiB VMEM, inside default scoped limits on v5e/v6e/v7x and well
        # under v7x's 64 MiB physical VMEM.
        itemsize = jnp.dtype(o2.dtype).itemsize
        max_rows = 8192 if itemsize <= 2 else 4096
        tile_rows = min(m_rows, max_rows)
        num_tiles = pl.cdiv(m_rows, tile_rows)       # total row-tiles

        # Parallel axis: number of TensorCores (2 on v7x, 1 on v5e/v6e).
        num_chunks = max(1, min(_num_tensorcores(), num_tiles))
        steps = pl.cdiv(num_tiles, num_chunks)       # reduction steps / chunk
        need_mask = (num_chunks * steps * tile_rows != m_rows)

        if num_chunks * steps == num_tiles:
            def in_map(p, k):
                return (p * steps + k, 0)
        else:
            # Clamp so the DMA window stays in bounds; the duplicate tile a
            # clamped index re-reads is fully masked out inside the kernel.
            def in_map(p, k):
                return (jnp.minimum(p * steps + k, num_tiles - 1), 0)

        partials = pl.pallas_call(
            _make_kl_kernel(m_rows, tile_rows, steps, need_mask),
            out_shape=jax.ShapeDtypeStruct((num_chunks, 1, LANES), jnp.float32),
            grid_spec=pltpu.PrefetchScalarGridSpec(
                num_scalar_prefetch=0,
                grid=(num_chunks, steps),
                in_specs=[
                    pl.BlockSpec((tile_rows, LANES), in_map),
                    pl.BlockSpec((tile_rows, LANES), in_map),
                ],
                out_specs=pl.BlockSpec((1, 1, LANES), lambda p, k: (p, 0, 0)),
            ),
            compiler_params=pltpu.CompilerParams(
                dimension_semantics=("parallel", "arbitrary"),
            ),
        )(o2, t2)

        # Tiny cross-chunk/lane reduce; fuses with the tail add and the final
        # scale into one trivial XLA op, so keeping it outside the kernel
        # costs no extra dispatch worth chasing.
        total = jnp.sum(partials) + tail

    # Fold the 0.5 KL factor into the final mean divide. (Returned in the
    # input dtype, matching torch; drops a few bits for bf16 inputs.)
    return (total / (2.0 * n_elems)).astype(output.dtype)


def kl_divergence_loss_ref(output, target):
    """Pure-JAX reference (matches torch kl_divergence(Normal, Normal).mean())."""
    d = output.astype(jnp.float32) - target.astype(jnp.float32)
    return jnp.mean(0.5 * d * d)


if __name__ == "__main__":
    root = jax.random.PRNGKey(0)

    cases = [
        # (shape, dtype, rtol, atol)
        ((2, 4, 16, 16), jnp.float32, 1e-5, 1e-6),     # canonical small NCHW: single tile
        ((3, 5, 7, 11), jnp.float32, 1e-5, 1e-6),      # ragged size: plain-JAX tail path
        ((4, 4, 320, 128), jnp.float32, 1e-4, 1e-6),   # multi-tile: masked last tile
        ((2, 4, 16, 16), jnp.bfloat16, 1e-2, 1e-3),    # native narrow dtype, in-kernel cast
    ]

    for idx, (shape, dtype, rtol, atol) in enumerate(cases):
        k1, k2 = jax.random.split(jax.random.fold_in(root, idx))
        output = jax.random.normal(k1, shape, dtype=jnp.float32).astype(dtype)
        target = jax.random.normal(k2, shape, dtype=jnp.float32).astype(dtype)

        loss = kl_divergence_loss(output, target)
        jax.block_until_ready(loss)

        ref = kl_divergence_loss_ref(output, target)
        assert jnp.allclose(loss.astype(jnp.float32), ref, rtol=rtol, atol=atol), (
            shape, dtype, loss, ref)

    print("KERNEL_OK")
</pallas_src>

<mosaic_0001>
module attributes {stable_mosaic.version = 11 : i64} {
  func.func @kernel(%arg0: i32, %arg1: i32, %arg2: memref<16x128xf32, #tpu.memory_space<vmem>>, %arg3: memref<16x128xf32, #tpu.memory_space<vmem>>, %arg4: memref<1x1x128xf32, #tpu.memory_space<vmem>>) attributes {dimension_semantics = [#tpu.dimension_semantics<parallel>, #tpu.dimension_semantics<arbitrary>], iteration_bounds = array<i64: 1, 1>, scalar_prefetch = 0 : i64, scratch_operands = 0 : i64, tpu.core_type = #tpu.core_type<tc>, window_params = [{transform_indices = @transform_0, window_bounds = array<i64: 16, 128>}, {transform_indices = @transform_1, window_bounds = array<i64: 16, 128>}, {transform_indices = @transform_2, window_bounds = array<i64: 1, 1, 128>}]} {
    %c0_i32 = arith.constant 0 : i32
    %0 = arith.cmpi eq, %arg1, %c0_i32 : i32
    %1 = arith.extui %0 : i1 to i32
    %c0_i32_0 = arith.constant 0 : i32
    %2 = arith.cmpi ne, %1, %c0_i32_0 : i32
    scf.if %2 {
      %cst_10 = arith.constant 0.000000e+00 : f32
      %12 = vector.broadcast %cst_10 : f32 to vector<1x1x128xf32>
      %c0_11 = arith.constant 0 : index
      %c0_12 = arith.constant 0 : index
      %c0_13 = arith.constant 0 : index
      %13 = vector.load %arg4[%c0_11, %c0_12, %c0_13] : memref<1x1x128xf32, #tpu.memory_space<vmem>>, vector<1x1x128xf32>
      tpu.vector_store %arg4[%c0_11, %c0_12, %c0_13], %12 {strides = array<i32>} : memref<1x1x128xf32, #tpu.memory_space<vmem>>, vector<1x1x128xf32>,
    } else {
    }
    %c0 = arith.constant 0 : index
    %c0_1 = arith.constant 0 : index
    %3 = vector.load %arg2[%c0, %c0_1] : memref<16x128xf32, #tpu.memory_space<vmem>>, vector<16x128xf32>
    %c0_2 = arith.constant 0 : index
    %c0_3 = arith.constant 0 : index
    %4 = vector.load %arg3[%c0_2, %c0_3] : memref<16x128xf32, #tpu.memory_space<vmem>>, vector<16x128xf32>
    %5 = arith.subf %3, %4 : vector<16x128xf32>
    %c0_4 = arith.constant 0 : index
    %c0_5 = arith.constant 0 : index
    %c0_6 = arith.constant 0 : index
    %6 = vector.load %arg4[%c0_4, %c0_5, %c0_6] : memref<1x1x128xf32, #tpu.memory_space<vmem>>, vector<1x1x128xf32>
    %7 = arith.mulf %5, %5 : vector<16x128xf32>
    %cst = arith.constant dense<0.000000e+00> : vector<128xf32>
    %8 = vector.multi_reduction <add>, %7, %cst [0] : vector<16x128xf32> to vector<128xf32>
    %9 = vector.shape_cast %8 : vector<128xf32> to vector<1x1x128xf32>
    %10 = arith.addf %6, %9 : vector<1x1x128xf32>
    %c0_7 = arith.constant 0 : index
    %c0_8 = arith.constant 0 : index
    %c0_9 = arith.constant 0 : index
    %11 = vector.load %arg4[%c0_7, %c0_8, %c0_9] : memref<1x1x128xf32, #tpu.memory_space<vmem>>, vector<1x1x128xf32>
    tpu.vector_store %arg4[%c0_7, %c0_8, %c0_9], %10 {strides = array<i32>} : memref<1x1x128xf32, #tpu.memory_space<vmem>>, vector<1x1x128xf32>,
    return
  }
  func.func @transform_0(%arg0: i32, %arg1: i32) -> (i32, i32) {
    %c1_i32 = arith.constant 1 : i32
    %0 = arith.muli %arg0, %c1_i32 : i32
    %1 = arith.addi %0, %arg1 : i32
    %c0_i32 = arith.constant 0 : i32
    %c0_i32_0 = arith.constant 0 : i32
    return %1, %c0_i32 : i32, i32
  }
  func.func @transform_1(%arg0: i32, %arg1: i32) -> (i32, i32) {
    %c1_i32 = arith.constant 1 : i32
    %0 = arith.muli %arg0, %c1_i32 : i32
    %1 = arith.addi %0, %arg1 : i32
    %c0_i32 = arith.constant 0 : i32
    %c0_i32_0 = arith.constant 0 : i32
    return %1, %c0_i32 : i32, i32
  }
  func.func @transform_2(%arg0: i32, %arg1: i32) -> (i32, i32, i32) {
    %c0_i32 = arith.constant 0 : i32
    %c0_i32_0 = arith.constant 0 : i32
    %c0_i32_1 = arith.constant 0 : i32
    return %arg0, %c0_i32, %c0_i32_0 : i32, i32, i32
  }
}

</mosaic_0001>

<bundles_post_ra>
// kernel: tpu_custom_call.1
= control target key start
LH: loop header
LB: loop body
LE: loop exit
PB: predicated region body
PF: predicated region fallthrough
CT: control target
= control target key end

     0   :  { %7 = vsyncpa [#allocation3], 0  ;;  %s193_s0 = inlined_call_operand.hbm [shape: f32[16,128], index: 0, kind: input, shape index: {}]   ;;  %s194_s1 = inlined_call_operand.hbm [shape: f32[16,128], index: 1, kind: input, shape index: {}]   ;;  %s195_s2 = inlined_call_operand.hbm [shape: f32[1,1,128], index: 2, kind: output, shape index: {}]  }
   0x1   :  { %8 = vsyncpa [#allocation6], 0 }
   0x2   :  { %9 = vsyncpa [#allocation4], 0  ;;  %s163_s9 = smov [#allocation2]  }
   0x3   :  { %s19_s10 = sshll.u32 %s163_s9, 4  ;;  %s20_s10 = int_to_ptr.vmem [resolvable:$true] %s19_s10 }
   0x4   :  { %s105_s11 = scalar_lea.vmem %s20_s10, 256  ;;  %p110_p1 = scmp.lt.s32.totalorder %s20_s10, %s20_s10 }
   0x5   :  { %p106_p0 = scmp.ne.s32.totalorder %s20_s10, %s105_s11  ;;  %p111_p2 = scmp.lt.s32.totalorder %s105_s11, %s105_s11 }
   0x7   :  { %p112_p3 = por %p111_p2, %p110_p1 }
   0x9   :  { %p113_p4 = pnand %p112_p3, %p106_p0 }
   0xb   :  { %116 = shalt.err (!%p113_p4)
}
   0xc   :  { %s164_s12 = smov 128   ;;  %s165_s13 = smov 8  }
   0xd   :  { %25 = dma.hbm_to_vmem [thread:$0]  %s193_s0, 256, %s20_s10, [#allocation3], %s164_s12, %s164_s12, %s165_s13  }
   0xe   :  { %s166_s16 = smov [#allocation5]  }
   0xf   :  { %s35_s17 = sshll.u32 %s166_s16, 4  ;;  %s36_s17 = int_to_ptr.vmem [resolvable:$true] %s35_s17 }
  0x10   :  { %s125_s18 = scalar_lea.vmem %s36_s17, 256  ;;  %p130_p6 = scmp.lt.s32.totalorder %s36_s17, %s36_s17 }
  0x11   :  { %p126_p5 = scmp.ne.s32.totalorder %s36_s17, %s125_s18  ;;  %p131_p7 = scmp.lt.s32.totalorder %s125_s18, %s125_s18 }
  0x13   :  { %p132_p8 = por %p131_p7, %p130_p6 }
  0x15   :  { %p133_p9 = pnand %p132_p8, %p126_p5 }
  0x17   :  { %136 = shalt.err (!%p133_p9)
}
  0x18   :  { %41 = dma.hbm_to_vmem [thread:$0]  %s194_s1, 256, %s36_s17, [#allocation6], %s164_s12, %s164_s12, %s165_s13  }
  0x19   :  { %157 = dma.done.wait [#allocation3], 256  }
  0x1a   :  { %158 = vsyncadd [#allocation3], 4294967040 }
  0x1b   :  { %159 = dma.done.wait [#allocation6], 256  }
  0x1c   :  { %160 = vsyncadd [#allocation6], 4294967040  ;;  %v167_v0 = vmov 0.0   ;;  %v57_v1 = vld [vmem:[#allocation2] sm:$0xff]  ;;  %v58_v2 = vld [vmem:[#allocation2 + $0x8] sm:$0xff]  ;;  %s168_s0 = smov [#allocation7]  }
  0x1d   :  { %56 = vst [vmem:[#allocation7] sm:$0x1] %v167_v0  ;;  %v59_v3 = vld [vmem:[#allocation5] sm:$0xff]  ;;  %v60_v4 = vld [vmem:[#allocation5 + $0x8] sm:$0xff]  ;;  %s81_s1 = sshll.u32 %s168_s0, 4  ;;  %s82_s1 = int_to_ptr.vmem [resolvable:$true] %s81_s1 }
  0x1e   :  { %v61_v5 = vsub.f32 %v57_v1, %v59_v3  ;;  %v62_v6 = vsub.f32 %v58_v2, %v60_v4  ;;  %s137_s21 = scalar_lea.vmem %s82_s1, 16  ;;  %s141_s22 = scalar_lea.vmem %s82_s1, 32 }
  0x1f   :  { %p138_p10 = scmp.ne.s32.totalorder %s82_s1, %s137_s21  ;;  %p142_p11 = scmp.lt.s32.totalorder %s82_s1, %s82_s1 }
  0x20   :  { %v64_v7 = vmul.f32 %v61_v5, %v61_v5  ;;  %v65_v8 = vmul.f32 %v62_v6, %v62_v6  ;;  %p143_p12 = scmp.lt.s32.totalorder %s141_s22, %s137_s21 }
  0x22   :  { %v66_v9 = vadd.f32 %v65_v8, %v64_v7  ;;  %p144_p13 = por %p143_p12, %p142_p11 }
  0x24   :  { %v67_v10 = vrot.slane %v66_v9, 4  ;;  %v63_v15 = vld [vmem:[#allocation7] sm:$0x1]  ;;  %p145_p0 = pnand %p144_p13, %p138_p10 }
  0x26   :  { %v68_v11 = vadd.f32 %v67_v10, %v66_v9 }
  0x28   :  { %v69_v12 = vrot.slane %v68_v11, 2 }
  0x2a   :  { %v70_v13 = vadd.f32 %v69_v12, %v68_v11 }
  0x2c   :  { %v71_v14 = vrot.slane %v70_v13, 1 }
  0x2e   :  { %v72_v16 = vadd.f32 %v71_v14, %v70_v13 }
  0x30   :  { %v73_v17 = vadd.f32 %v72_v16, %v63_v15 }
  0x32   :  { %74 = vst [vmem:[#allocation7] sm:$0x1] %v73_v17 }
  0x33   :  { %148 = shalt.err (!%p145_p0)
}
  0x34   :  { %84 = dma.vmem_to_hbm [thread:$0]  %s82_s1, 16, %s195_s2, [#allocation4]  }
  0x35   :  { %161 = dma.done.wait [#allocation4], 16  }
  0x36   :  { %162 = vsyncadd [#allocation4], 4294967280 }
  0x37   :  { %88 = vsyncpa [#allocation3], 1 }
  0x38   :  { %89 = vsyncpa [#allocation6], 1 }
  0x39   :  { %90 = vsyncpa [#allocation4], 1 }

</bundles_post_ra>
